<compile_context>
chip_gen: v7x
topology: tpu7x:2x2x1
jax: 0.10.0
libtpu: 0.0.40
codegen_flags: <defaults>
</compile_context>

<pallas_src>
import numpy as np
import jax
import jax.numpy as jnp
from jax.experimental import pallas as pl
from jax.experimental.pallas import tpu as pltpu

POOL_SIZES = (1, 2, 3, 6)
KK = sum(k * k for k in POOL_SIZES)        # 1 + 4 + 9 + 36 = 50 pooled positions


# ----------------------------- glue: static matrices -------------------------

def adaptive_pool_matrix(out_size, in_size):
    """P[i, h] = 1/len(region_i) if h in region_i (PyTorch AdaptiveAvgPool rule)."""
    P = np.zeros((out_size, in_size), np.float32)
    for i in range(out_size):
        start = (i * in_size) // out_size
        end = -(-((i + 1) * in_size) // out_size)  # ceil
        P[i, start:end] = 1.0 / (end - start)
    return P


def bilinear_up_matrix(out_size, in_size):
    """U[o, i] bilinear weights, align_corners=True (PyTorch F.upsample)."""
    U = np.zeros((out_size, in_size), np.float32)
    if in_size == 1:
        U[:, 0] = 1.0
        return U
    for o in range(out_size):
        src = 0.0 if out_size == 1 else o * (in_size - 1) / (out_size - 1)
        i0 = min(int(np.floor(src)), in_size - 1)
        i1 = min(i0 + 1, in_size - 1)
        w1 = src - i0
        U[o, i0] += 1.0 - w1
        U[o, i1] += w1
    return U


def _stacked_glue(H, W, Co):
    """P_all (KK, H*W), U_all (H*W, KK), block-diagonal level mask (KK, 4*Co)."""
    P_all = np.concatenate(
        [np.kron(adaptive_pool_matrix(k, H), adaptive_pool_matrix(k, W))
         for k in POOL_SIZES], axis=0)
    U_all = np.concatenate(
        [np.kron(bilinear_up_matrix(H, k), bilinear_up_matrix(W, k))
         for k in POOL_SIZES], axis=1)
    mask = np.zeros((KK, 4 * Co), np.float32)
    off = 0
    for lvl, k in enumerate(POOL_SIZES):
        mask[off:off + k * k, lvl * Co:(lvl + 1) * Co] = 1.0
        off += k * k
    return P_all, U_all, mask


# ----------------------------- Pallas kernels --------------------------------

def pool_kernel(x_ref, p_ref, pooled_ref, acc_ref):
    # x_ref:      (1, TH, W, C)   one spatial row-tile of one batch element
    # p_ref:      (KK, TH*W)      matching column slab of the stacked pool matrix
    # pooled_ref: (1, KK, C) f32  per-batch pooled activations (all 4 levels)
    # acc_ref:    (KK, C) f32     VMEM accumulator across spatial tiles
    t = pl.program_id(1)

    @pl.when(t == 0)
    def _():
        acc_ref[...] = jnp.zeros_like(acc_ref)

    _, th, w, c = x_ref.shape
    x = x_ref[0].reshape(th * w, c)          # input dtype (no f32 cast of x)
    acc_ref[...] += jnp.dot(p_ref[...], x, preferred_element_type=jnp.float32)

    @pl.when(t == pl.num_programs(1) - 1)
    def _():
        pooled_ref[0] = acc_ref[...]


def emit_kernel(pooled_ref, x_ref, u_ref, wf_ref, b_ref, m_ref, o_ref):
    # pooled_ref: (1, KK, C) f32
    # x_ref:      (1, TH, W, C)
    # u_ref:      (TH*W, KK)      row slab of the stacked bilinear-upsample matrix
    # wf_ref:     (C, 4*Co) f32   per-level 1x1 conv weights with BN scale folded in
    # b_ref:      (1, 4*Co) f32   per-level folded BN bias
    # m_ref:      (KK, 4*Co) f32  block-diagonal mask (pooled row -> its level only)
    # o_ref:      (1, TH, W, 2C)  [ x | feat1 | feat2 | feat3 | feat4 ]
    _, th, w, c = x_ref.shape

    pooled = pooled_ref[0]                                              # (KK, C)
    z = jnp.dot(pooled, wf_ref[...], preferred_element_type=jnp.float32)
    y = jnp.maximum(z + b_ref[...], 0.0) * m_ref[...]                   # (KK, 4Co)
    up = jnp.dot(u_ref[...], y.astype(u_ref.dtype),
                 preferred_element_type=jnp.float32)                    # (TH*W, 4Co)
    up = up.reshape(th, w, -1).astype(o_ref.dtype)
    # Single lane-dense 2C-wide store; this fuses the torch.cat.
    o_ref[0] = jnp.concatenate([x_ref[0], up], axis=-1)


# ----------------------------- wrapper ---------------------------------------

def _pick_row_tile(H, W, C, itemsize, target_bytes=2 << 20):
    """Largest TH dividing H such that (TH*W) is lane-tile aligned and the x
    row-tile stays under target_bytes (falls back to the smallest legal TH)."""
    legal = [th for th in range(1, H + 1)
             if H % th == 0 and (th == H or (th * W) % 128 == 0)]
    fitting = [th for th in legal if th * W * C * itemsize <= target_bytes]
    return max(fitting) if fitting else min(legal)


def _vmem_limit(block_bytes_total):
    # Double-buffered pipeline blocks + headroom. At least 32 MiB (v5e default
    # scoped limit is only 16 MiB); capped at 64 MiB so it stays within v7x
    # physical VMEM as well.
    return int(min(64 * 1024 * 1024,
                   max(32 * 1024 * 1024, 2 * block_bytes_total + (4 << 20))))


def init_params(key, in_channels):
    assert in_channels % 4 == 0, "in_channels must be divisible by 4"
    out_channels = in_channels // 4
    params = []
    for i, _k in enumerate(POOL_SIZES):
        kw, kg, kb = jax.random.split(jax.random.fold_in(key, i), 3)
        # PyTorch Conv2d weight (Co, C, 1, 1) -> stored as (C, Co) for matmul.
        w = (jax.random.normal(kw, (in_channels, out_channels), jnp.float32)
             * (1.0 / np.sqrt(in_channels)))
        gamma = 1.0 + 0.1 * jax.random.normal(kg, (out_channels,), jnp.float32)
        beta = 0.1 * jax.random.normal(kb, (out_channels,), jnp.float32)
        running_mean = jnp.zeros((out_channels,), jnp.float32)
        running_var = jnp.ones((out_channels,), jnp.float32)
        eps = 1e-5
        # Eval-mode BatchNorm folded into scale/bias.
        scale = gamma / jnp.sqrt(running_var + eps)
        bias = beta - running_mean * scale
        params.append((w, scale.reshape(1, -1), bias.reshape(1, -1)))
    return params


def pyramid_pooling_forward(x_nhwc, params, row_tile=None):
    B, H, W, C = x_nhwc.shape
    assert C % 4 == 0, "in_channels must be divisible by 4"
    Co = C // 4
    dtype = x_nhwc.dtype
    isz = jnp.dtype(dtype).itemsize

    if row_tile is None:
        row_tile = _pick_row_tile(H, W, C, isz)
    TH = row_tile
    assert H % TH == 0 and (TH == H or (TH * W) % 128 == 0), (TH, H, W)
    n_hw = H // TH

    # Static glue matrices, kept in the input dtype so bf16 inputs feed the MXU
    # natively (f32 accumulation comes from preferred_element_type).
    P_np, U_np, M_np = _stacked_glue(H, W, Co)
    P_all = jnp.asarray(P_np, dtype)            # (KK, H*W)
    U_all = jnp.asarray(U_np, dtype)            # (H*W, KK)
    mask = jnp.asarray(M_np, jnp.float32)       # (KK, 4*Co)

    # Fold eval-mode BN scale into the conv weights; stack the 4 levels along
    # the output-channel axis so one matmul handles all levels.
    Wf_all = jnp.concatenate([w * s for (w, s, _) in params], axis=1).astype(jnp.float32)
    b_all = jnp.concatenate([b for (_, _, b) in params], axis=1).astype(jnp.float32)

    # ---- kernel 1: pooled[b] = P_all @ x[b], accumulated over spatial tiles.
    pool_blocks = (TH * W * C * isz) + (KK * TH * W * isz) + 2 * (KK * C * 4)
    pooled = pl.pallas_call(
        pool_kernel,
        out_shape=jax.ShapeDtypeStruct((B, KK, C), jnp.float32),
        grid=(B, n_hw),
        in_specs=[
            pl.BlockSpec((1, TH, W, C), lambda b, t: (b, t, 0, 0)),
            pl.BlockSpec((KK, TH * W), lambda b, t: (0, t)),
        ],
        out_specs=pl.BlockSpec((1, KK, C), lambda b, t: (b, 0, 0)),
        scratch_shapes=[pltpu.VMEM((KK, C), jnp.float32)],
        compiler_params=pltpu.CompilerParams(
            dimension_semantics=("parallel", "arbitrary"),
            vmem_limit_bytes=_vmem_limit(pool_blocks)),
        cost_estimate=pl.CostEstimate(
            flops=2 * B * KK * H * W * C,
            transcendentals=0,
            bytes_accessed=B * H * W * C * isz + B * KK * H * W * isz + B * KK * C * 4),
    )(x_nhwc, P_all)

    # ---- kernel 2: 1x1 conv (BN folded) + ReLU + bilinear upsample + concat.
    emit_blocks = ((KK * C * 4) + (TH * W * C * isz) + (TH * W * KK * isz)
                   + (C * 4 * Co * 4) + (4 * Co * 4) + (KK * 4 * Co * 4)
                   + (TH * W * 2 * C * isz))
    out = pl.pallas_call(
        emit_kernel,
        out_shape=jax.ShapeDtypeStruct((B, H, W, 2 * C), dtype),
        grid=(B, n_hw),
        in_specs=[
            pl.BlockSpec((1, KK, C), lambda b, t: (b, 0, 0)),
            pl.BlockSpec((1, TH, W, C), lambda b, t: (b, t, 0, 0)),
            pl.BlockSpec((TH * W, KK), lambda b, t: (t, 0)),
            pl.BlockSpec((C, 4 * Co), lambda b, t: (0, 0)),
            pl.BlockSpec((1, 4 * Co), lambda b, t: (0, 0)),
            pl.BlockSpec((KK, 4 * Co), lambda b, t: (0, 0)),
        ],
        out_specs=pl.BlockSpec((1, TH, W, 2 * C), lambda b, t: (b, t, 0, 0)),
        compiler_params=pltpu.CompilerParams(
            dimension_semantics=("parallel", "parallel"),
            vmem_limit_bytes=_vmem_limit(emit_blocks)),
        cost_estimate=pl.CostEstimate(
            flops=2 * B * (KK * C * 4 * Co + H * W * KK * 4 * Co),
            transcendentals=0,
            bytes_accessed=(B * (H * W * C + H * W * 2 * C) * isz
                            + B * H * W * KK * isz + C * 4 * Co * 4)),
    )(pooled, x_nhwc, U_all, Wf_all, b_all, mask)
    return out


# ----------------------------- plain-JAX reference ---------------------------

def pyramid_pooling_reference(x_nhwc, params):
    B, H, W, C = x_nhwc.shape
    x2 = x_nhwc.reshape(B, H * W, C).astype(jnp.float32)
    feats = [x_nhwc]
    for (w, scale, bias), k in zip(params, POOL_SIZES):
        P = jnp.asarray(np.kron(adaptive_pool_matrix(k, H), adaptive_pool_matrix(k, W)))
        U = jnp.asarray(np.kron(bilinear_up_matrix(H, k), bilinear_up_matrix(W, k)))
        pooled = jnp.einsum('ph,bhc->bpc', P, x2)
        y = jnp.maximum(jnp.einsum('bpc,cd->bpd', pooled, w) * scale + bias, 0.0)
        up = jnp.einsum('hp,bpd->bhd', U, y)
        feats.append(up.reshape(B, H, W, -1).astype(x_nhwc.dtype))
    return jnp.concatenate(feats, axis=-1)


if __name__ == "__main__":
    key = jax.random.PRNGKey(0)
    B, C, H, W = 2, 8, 16, 16          # small shapes; in_channels divisible by 4

    kx, kp = jax.random.split(key)
    x_nchw = jax.random.normal(kx, (B, C, H, W), jnp.float32)
    x_nhwc = jnp.transpose(x_nchw, (0, 2, 3, 1))   # NCHW (torch) -> NHWC (kernel)

    params = init_params(kp, C)

    # row_tile=8 -> 2 spatial tiles per image, exercising the pooled-accumulator
    # (spatial-reduction) path; 8 * 16 = 128 keeps the flattened tile lane-aligned.
    out = pyramid_pooling_forward(x_nhwc, params, row_tile=8)
    out = jax.block_until_ready(out)
    assert out.shape == (B, H, W, 2 * C), out.shape

    ref = jax.block_until_ready(pyramid_pooling_reference(x_nhwc, params))
    np.testing.assert_allclose(np.asarray(out), np.asarray(ref), rtol=1e-3, atol=1e-3)

    print("KERNEL_OK")
</pallas_src>

<mosaic_0001>
module attributes {stable_mosaic.version = 11 : i64} {
  func.func @pool_kernel(%arg0: i32, %arg1: i32, %arg2: memref<1x8x16x8xf32, #tpu.memory_space<vmem>>, %arg3: memref<50x128xf32, #tpu.memory_space<vmem>>, %arg4: memref<1x50x8xf32, #tpu.memory_space<vmem>>, %arg5: memref<50x8xf32, #tpu.memory_space<vmem>>) attributes {dimension_semantics = [#tpu.dimension_semantics<parallel>, #tpu.dimension_semantics<arbitrary>], iteration_bounds = array<i64: 2, 2>, scalar_prefetch = 0 : i64, scratch_operands = 1 : i64, tpu.core_type = #tpu.core_type<tc>, window_params = [{transform_indices = @transform_0, window_bounds = array<i64: 1, 8, 16, 8>}, {transform_indices = @transform_1, window_bounds = array<i64: 50, 128>}, {transform_indices = @transform_2, window_bounds = array<i64: 1, 50, 8>}]} {
    %c0_i32 = arith.constant 0 : i32
    %0 = arith.cmpi eq, %arg1, %c0_i32 : i32
    %1 = arith.extui %0 : i1 to i32
    %c0_i32_0 = arith.constant 0 : i32
    %2 = arith.cmpi ne, %1, %c0_i32_0 : i32
    scf.if %2 {
      %cst_11 = arith.constant 0.000000e+00 : f32
      %14 = vector.broadcast %cst_11 : f32 to vector<50x8xf32>
      %c0_12 = arith.constant 0 : index
      %c0_13 = arith.constant 0 : index
      %15 = vector.load %arg5[%c0_12, %c0_13] : memref<50x8xf32, #tpu.memory_space<vmem>>, vector<50x8xf32>
      tpu.vector_store %arg5[%c0_12, %c0_13], %14 {strides = array<i32>} : memref<50x8xf32, #tpu.memory_space<vmem>>, vector<50x8xf32>,
    } else {
    }
    %c0 = arith.constant 0 : index
    %c0_1 = arith.constant 0 : index
    %c0_2 = arith.constant 0 : index
    %c0_3 = arith.constant 0 : index
    %3 = vector.load %arg2[%c0, %c0_1, %c0_2, %c0_3] : memref<1x8x16x8xf32, #tpu.memory_space<vmem>>, vector<1x8x16x8xf32>
    %4 = vector.shape_cast %3 : vector<1x8x16x8xf32> to vector<8x16x8xf32>
    %5 = vector.shape_cast %4 : vector<8x16x8xf32> to vector<128x8xf32>
    %c0_4 = arith.constant 0 : index
    %c0_5 = arith.constant 0 : index
    %6 = vector.load %arg5[%c0_4, %c0_5] : memref<50x8xf32, #tpu.memory_space<vmem>>, vector<50x8xf32>
    %c0_6 = arith.constant 0 : index
    %c0_7 = arith.constant 0 : index
    %7 = vector.load %arg3[%c0_6, %c0_7] : memref<50x128xf32, #tpu.memory_space<vmem>>, vector<50x128xf32>
    %cst = arith.constant dense<0.000000e+00> : vector<50x8xf32>
    %8 = tpu.matmul %7, %5, %cst {dimension_numbers = #tpu.dot_dimension_numbers<[1], [0], [0], [1], [0, 0, 1, 1], [], []>} : vector<50x128xf32>, vector<128x8xf32>, vector<50x8xf32> -> vector<50x8xf32>
    %9 = arith.addf %6, %8 : vector<50x8xf32>
    %c0_8 = arith.constant 0 : index
    %c0_9 = arith.constant 0 : index
    %10 = vector.load %arg5[%c0_8, %c0_9] : memref<50x8xf32, #tpu.memory_space<vmem>>, vector<50x8xf32>
    tpu.vector_store %arg5[%c0_8, %c0_9], %9 {strides = array<i32>} : memref<50x8xf32, #tpu.memory_space<vmem>>, vector<50x8xf32>,
    %c1_i32 = arith.constant 1 : i32
    %11 = arith.cmpi eq, %arg1, %c1_i32 : i32
    %12 = arith.extui %11 : i1 to i32
    %c0_i32_10 = arith.constant 0 : i32
    %13 = arith.cmpi ne, %12, %c0_i32_10 : i32
    scf.if %13 {
      %c0_11 = arith.constant 0 : index
      %c0_12 = arith.constant 0 : index
      %14 = vector.load %arg5[%c0_11, %c0_12] : memref<50x8xf32, #tpu.memory_space<vmem>>, vector<50x8xf32>
      %c0_13 = arith.constant 0 : index
      %c0_14 = arith.constant 0 : index
      %c0_15 = arith.constant 0 : index
      %15 = vector.load %arg4[%c0_13, %c0_14, %c0_15] : memref<1x50x8xf32, #tpu.memory_space<vmem>>, vector<1x50x8xf32>
      %16 = vector.shape_cast %15 : vector<1x50x8xf32> to vector<50x8xf32>
      %17 = vector.shape_cast %14 : vector<50x8xf32> to vector<1x50x8xf32>
      tpu.vector_store %arg4[%c0_13, %c0_14, %c0_15], %17 {strides = array<i32>} : memref<1x50x8xf32, #tpu.memory_space<vmem>>, vector<1x50x8xf32>,
    } else {
    }
    return
  }
  func.func @transform_0(%arg0: i32, %arg1: i32) -> (i32, i32, i32, i32) {
    %c0_i32 = arith.constant 0 : i32
    %c0_i32_0 = arith.constant 0 : i32
    %c0_i32_1 = arith.constant 0 : i32
    return %arg0, %arg1, %c0_i32, %c0_i32_0 : i32, i32, i32, i32
  }
  func.func @transform_1(%arg0: i32, %arg1: i32) -> (i32, i32) {
    %c0_i32 = arith.constant 0 : i32
    %c0_i32_0 = arith.constant 0 : i32
    return %c0_i32, %arg1 : i32, i32
  }
  func.func @transform_2(%arg0: i32, %arg1: i32) -> (i32, i32, i32) {
    %c0_i32 = arith.constant 0 : i32
    %c0_i32_0 = arith.constant 0 : i32
    %c0_i32_1 = arith.constant 0 : i32
    return %arg0, %c0_i32, %c0_i32_0 : i32, i32, i32
  }
}

</mosaic_0001>

<bundles_post_ra>
// kernel: tpu_custom_call.1
= control target key start
LH: loop header
LB: loop body
LE: loop exit
PB: predicated region body
PF: predicated region fallthrough
CT: control target
= control target key end

     0   :  { %s792_s9 = smov 0   ;;  %s794_s10 = smov 0   ;;  %s948_s0 = inlined_call_operand.vmem [shape: f32[2,16,16,8], index: 0, kind: input, shape index: {}]   ;;  %s949_s1 = inlined_call_operand.vmem [shape: f32[50,256], index: 1, kind: input, shape index: {}]   ;;  %s950_s2 = inlined_call_operand.vmem [shape: f32[2,50,8], index: 2, kind: output, shape index: {}]  }
   0x1   :  { %s796_s11 = smov 0   ;;  %s798_s12 = smov 0  }
   0x2   :  { %s800_s13 = smov 0   ;;  %s802_s14 = smov 0  }
   0x3   :  { %s804_s15 = smov 0  }
   0x4 LB: > { %s21_s16 = sadd.s32 1, %s763_s13  ;;  %s24_s17 = sadd.s32 1, %s767_s14  ;;  %s771_s15 = sphi %s804_s15, %s12_s15   ;;  %s767_s14 = sphi %s802_s14, %s956_s14   ;;  %s763_s13 = sphi %s800_s13, %s955_s13   ;;  %s759_s12 = sphi %s798_s12, %s954_s12   ;;  %s755_s11 = sphi %s796_s11, %s953_s11   ;;  %s751_s10 = sphi %s794_s10, %s952_s10   ;;  %s747_s9 = sphi %s792_s9, %s951_s9  }
   0x5   : > { %p22_p0 = scmp.ge.s32.totalorder %s21_s16, 2  ;;  %s59_s18 = sadd.s32 1, %s751_s10 }
   0x6   : > { %p66_p1 = scmp.ne.s32.totalorder %s751_s10, %s747_s9  ;;  %p67_p2 = scmp.eq.s32.totalorder %s771_s15, 0 }
   0x7   : > { %s958_s16 = smov (%p22_p0, %s21_s16), 0  ;;  %s960_s17 = smov (!%p22_p0, %s24_s17), %s767_s14 }
   0x8   : > { %s56_s19 = ssub.s32 %s763_s13, %s958_s16  ;;  %p68_p3 = por %p67_p2, %p66_p1 }
   0x9   : > { %p26_p4 = scmp.ge.s32.totalorder %s960_s17, 2  ;;  %p57_p5 = scmp.eq.s32.totalorder %s56_s19, 0 }
   0xa   : > { %p526_p6 = scmp.ge.s32.totalorder %s771_s15, 4 }
   0xb   : > { %s962_s17 = smov (%p26_p4, %s960_s17), 0 }
   0xc   : > { %s841_s20 = scalar_select %p57_p5, %s751_s10, %s59_s18  }
   0xd   : > { %118 = sbr.rel (%p526_p6) target bundleno = 28 (0x1c), region = 16 }
  0x14   : > { %135 = sbr.rel (!%p68_p3) target bundleno = 28 (0x1c), region = 24  ;;  %s137_s21 = sand.u32 (%p68_p3), 1, %s751_s10  }
  0x15   : > { %s527_s22 = sshll.u32 (%p68_p3), %s763_s13, 3  ;;  %s654_s23 = smul.u32 (%p68_p3), 56, %s137_s21 }
  0x16   : > { %s141_s26 = scalar_lea.vmem (%p68_p3), %s949_s1, %s527_s22 }
  0x17   : > { %v181_v0 = vld [vmem:[%s141_s26] sm:$0xff] (%p68_p3)  ;;  %v183_v1 = vld [vmem:[%s141_s26 + $0x10] sm:$0xff] (%p68_p3)  ;;  %s139_s27 = scalar_lea.vmem (%p68_p3), [#allocation3], %s654_s23 }
  0x18   : > { %v185_v2 = vld [vmem:[%s141_s26 + $0x20] sm:$0xff] (%p68_p3)  ;;  %v187_v3 = vld [vmem:[%s141_s26 + $0x30] sm:$0xff] (%p68_p3)  ;;  %182 = vst [vmem:[%s139_s27] sm:$0xff] (%p68_p3), %v181_v0  ;;  %184 = vst [vmem:[%s139_s27 + $0x8] sm:$0xff] (%p68_p3), %v183_v1 }
  0x19   : > { %v189_v4 = vld [vmem:[%s141_s26 + $0x40] sm:$0xff] (%p68_p3)  ;;  %v191_v5 = vld [vmem:[%s141_s26 + $0x50] sm:$0xff] (%p68_p3)  ;;  %186 = vst [vmem:[%s139_s27 + $0x10] sm:$0xff] (%p68_p3), %v185_v2  ;;  %188 = vst [vmem:[%s139_s27 + $0x18] sm:$0xff] (%p68_p3), %v187_v3 }
  0x1a   : > { %190 = vst [vmem:[%s139_s27 + $0x20] sm:$0xff] (%p68_p3), %v189_v4  ;;  %192 = vst [vmem:[%s139_s27 + $0x28] sm:$0xff] (%p68_p3), %v191_v5  ;;  %v193_v6 = vld [vmem:[%s141_s26 + $0x60] sm:$0xff] (%p68_p3) }
  0x1b   : > { %194 = vst [vmem:[%s139_s27 + $0x30] sm:$0xff] %v193_v6 }
  0x1c PF: > { %p528_p7 = scmp.ge.s32.totalorder %s771_s15, 1  ;;  %p199_p8 = scmp.lt.s32.totalorder %s771_s15, 5 }
  0x1e   : > { %p200_p9 = pnand %p528_p7, %p199_p8 }
  0x1f   : > { %s206_s28 = sand.u32 (!%p200_p9), 1, %s747_s9   ;;  %s529_s29 = sshll.u32 (!%p200_p9), %s755_s11, 3 }
  0x20   : > { %203 = sbr.rel (%p200_p9) target bundleno = 317 (0x13d), region = 62  ;;  %p238_p10 = scmp.lt.s32.totalorder (!%p200_p9), %s759_s12, 1 }
  0x21   : > { %s655_s30 = smul.u32 (!%p200_p9), 56, %s206_s28  ;;  %p240_p11 = scmp.lt.s32.totalorder (!%p200_p9), %s529_s29, 15 }
  0x22   : > { %p534_p12 = scmp.ne.s32.totalorder (!%p200_p9), %s755_s11, 0 }
  0x23   : > { %s865_s23 = scalar_lea.vmem (!%p200_p9), [#allocation3], %s655_s30 }
  0x27   : > { %s964_s12 = smov (!%p238_p10, %s759_s12), 1  ;;  %s966_s29 = smov (!%p240_p11, %s529_s29), 15 }
  0x28   : > { %s531_s3 = sshll.u32 %s964_s12, 5  ;;  %s656_s4 = smul.u32 56, %s964_s12  ;;  %vm257_vm0 = vcmask (!%p534_p12), 64512   ;;  %vm264_vm1 = vcmask (!%p534_p12), 58368   ;;  %v773_v7 = vmov (!%p534_p12), 0.0  }
  0x29   : > { %s530_s5 = sshll.u32 %s966_s29, 1  ;;  %256 = sbr.rel (%p534_p12) target bundleno = 48 (0x30), region = 70  ;;  %258 = vst.msk [vmem:[#allocation2] sm:$0xff] (!%p534_p12), %vm257_vm0, %v773_v7  ;;  %259 = vst.msk [vmem:[#allocation2 + $0x8] sm:$0xff] (!%p534_p12), %vm257_vm0, %v773_v7 }
  0x2a   : > { %s244_s6 = sadd.s32 %s531_s3, %s530_s5  ;;  %s858_s18 = scalar_lea.vmem %s950_s2, %s656_s4  ;;  %260 = vst.msk [vmem:[#allocation2 + $0x10] sm:$0xff] (!%p534_p12), %vm257_vm0, %v773_v7  ;;  %261 = vst.msk [vmem:[#allocation2 + $0x18] sm:$0xff] (!%p534_p12), %vm257_vm0, %v773_v7 }
  0x2b   : > { %s532_s19 = sshll.u32 %s244_s6, 3  ;;  %262 = vst.msk [vmem:[#allocation2 + $0x20] sm:$0xff] (!%p534_p12), %vm257_vm0, %v773_v7  ;;  %263 = vst.msk [vmem:[#allocation2 + $0x28] sm:$0xff] (!%p534_p12), %vm257_vm0, %v773_v7 }
  0x2c   : > { %s863_s9 = scalar_lea.vmem %s948_s0, %s532_s19  ;;  %265 = vst.msk [vmem:[#allocation2 + $0x30] sm:$0x3] (!%p534_p12), %vm264_vm1, %v773_v7 }
  0x30 PF: > { %v266_v8 = vld [vmem:[%s863_s9] sm:$0xff]  ;;  %v267_v9 = vld [vmem:[%s863_s9 + $0x8] sm:$0xff]  ;;  %v268_v10 = vld [vmem:[%s863_s9 + $0x10] sm:$0xff]  ;;  %v774_v11 = vmov 0.0|0.0   ;;  %vm775_vm2 = vmmov 0   ;;  %v776_v14 = vmov 0.0  }
  0x31   : > { %614 = vmatprep.subr.bf16.mxu0 %v774_v11  ;;  %v615_v12 = vpack.c.bf16 %v267_v9, %v266_v8  ;;  %638 = vmatprep.subr.bf16.mxu1 %v774_v11  ;;  %v269_v13 = vld [vmem:[%s863_s9 + $0x18] sm:$0xff]  ;;  %v270_v16 = vld [vmem:[%s863_s9 + $0x20] sm:$0xff]  ;;  %v271_v17 = vld [vmem:[%s863_s9 + $0x28] sm:$0xff]  ;;  %vm403_vm3 = vcmask 64512   ;;  %vm410_vm4 = vcmask 58368   ;;  %p535_p13 = scmp.ne.s32.totalorder %s755_s11, 1 }
  0x32   : > { %593 = vmatprep.mubr.msk.f32.mxu0 %vm775_vm2, %v776_v14  ;;  %605 = vmatprep.mubr.msk.f32.mxu1 %vm775_vm2, %v776_v14  ;;  %v618_v15 = vpack.c.bf16 %v269_v13, %v268_v10  ;;  %v621_v18 = vpack.c.bf16 %v271_v17, %v270_v16  ;;  %v272_v19 = vld [vmem:[%s863_s9 + $0x30] sm:$0xff]  ;;  %v273_v20 = vld [vmem:[%s863_s9 + $0x38] sm:$0xff]  ;;  %v274_v22 = vld [vmem:[%s863_s9 + $0x40] sm:$0xff] }
  0x33   : > { %616 = vmatpush3.bf16.msra.mxu0 %v615_v12  ;;  %646 = vmatpush3.bf16.msra.mxu1 %v615_v12  ;;  %v624_v21 = vpack.c.bf16 %v273_v20, %v272_v19  ;;  %v275_v23 = vld [vmem:[%s863_s9 + $0x48] sm:$0xff]  ;;  %v276_v25 = vld [vmem:[%s863_s9 + $0x50] sm:$0xff]  ;;  %v277_v26 = vld [vmem:[%s863_s9 + $0x58] sm:$0xff] }
  0x34   : > { %617 = vmatprep.subr.bf16.mxu0 %v774_v11  ;;  %639 = vmatprep.subr.bf16.mxu1 %v774_v11  ;;  %v627_v24 = vpack.c.bf16 %v275_v23, %v274_v22  ;;  %v630_v27 = vpack.c.bf16 %v277_v26, %v276_v25  ;;  %v278_v28 = vld [vmem:[%s863_s9 + $0x60] sm:$0xff]  ;;  %v279_v29 = vld [vmem:[%s863_s9 + $0x68] sm:$0xff]  ;;  %v280_v31 = vld [vmem:[%s863_s9 + $0x70] sm:$0xff] }
  0x35   : > { %v633_v30 = vpack.c.bf16 %v279_v29, %v278_v28  ;;  %v281_v32 = vld [vmem:[%s863_s9 + $0x78] sm:$0xff]  ;;  %v291_v38 = vld [vmem:[%s865_s23 + $0x10] sm:$0xff]  ;;  %v292_v40 = vld [vmem:[%s865_s23 + $0x18] sm:$0xff] }
  0x36   : > { %v636_v33 = vpack.c.bf16 %v281_v32, %v280_v31  ;;  %v289_v34 = vld [vmem:[%s865_s23] sm:$0xff]  ;;  %v290_v36 = vld [vmem:[%s865_s23 + $0x8] sm:$0xff]  ;;  %v295_v39 = vld [vmem:[%s865_s23 + $0x30] sm:$0x3] }
  0x37   : > { %619 = vmatpush3.bf16.msra.mxu0 %v618_v15  ;;  %647 = vmatpush3.bf16.msra.mxu1 %v618_v15  ;;  %v293_v35 = vld [vmem:[%s865_s23 + $0x20] sm:$0xff]  ;;  %v294_v37 = vld [vmem:[%s865_s23 + $0x28] sm:$0xff]  ;;  %v283_v49 = vld [vmem:[#allocation2 + $0x8] sm:$0xff] }
  0x38   : > { %620 = vmatprep.subr.bf16.mxu0 %v774_v11  ;;  %640 = vmatprep.subr.bf16.mxu1 %v774_v11  ;;  %v282_v41 = vld [vmem:[#allocation2] sm:$0xff]  ;;  %v287_v50 = vld [vmem:[#allocation2 + $0x28] sm:$0xff]  ;;  %v284_v57 = vld [vmem:[#allocation2 + $0x10] sm:$0xff] }
  0x39   : > { %v286_v42 = vld [vmem:[#allocation2 + $0x20] sm:$0xff]  ;;  %v288_v58 = vld [vmem:[#allocation2 + $0x30] sm:$0x3]  ;;  %v285_v1 = vld [vmem:[#allocation2 + $0x18] sm:$0xff] }
  0x3b   : > { %622 = vmatpush3.bf16.msra.mxu0 %v621_v18  ;;  %648 = vmatpush3.bf16.msra.mxu1 %v621_v18 }
  0x3c   : > { %623 = vmatprep.subr.bf16.mxu0 %v774_v11  ;;  %641 = vmatprep.subr.bf16.mxu1 %v774_v11 }
  0x3f   : > { %625 = vmatpush3.bf16.msra.mxu0 %v624_v21  ;;  %649 = vmatpush3.bf16.msra.mxu1 %v624_v21 }
  0x40   : > { %626 = vmatprep.subr.bf16.mxu0 %v774_v11  ;;  %642 = vmatprep.subr.bf16.mxu1 %v774_v11 }
  0x43   : > { %628 = vmatpush3.bf16.msra.mxu0 %v627_v24  ;;  %650 = vmatpush3.bf16.msra.mxu1 %v627_v24 }
  0x44   : > { %629 = vmatprep.subr.bf16.mxu0 %v774_v11  ;;  %643 = vmatprep.subr.bf16.mxu1 %v774_v11 }
  0x47   : > { %631 = vmatpush3.bf16.msra.mxu0 %v630_v27  ;;  %651 = vmatpush3.bf16.msra.mxu1 %v630_v27 }
  0x48   : > { %632 = vmatprep.subr.bf16.mxu0 %v774_v11  ;;  %644 = vmatprep.subr.bf16.mxu1 %v774_v11 }
  0x4b   : > { %634 = vmatpush3.bf16.msra.mxu0 %v633_v30  ;;  %652 = vmatpush3.bf16.msra.mxu1 %v633_v30 }
  0x4c   : > { %635 = vmatprep.subr.bf16.mxu0 %v774_v11  ;;  %645 = vmatprep.subr.bf16.mxu1 %v774_v11 }
  0x4f   : > { %637 = vmatpush3.bf16.msra.mxu0 %v636_v33  ;;  %653 = vmatpush3.bf16.msra.mxu1 %v636_v33 }
  0x52   : > { %594 = vmatmul.mubr.f32.vlgmr.msra.gmra.mrb[0].mxu0 %v289_v34  ;;  %606 = vmatmul.mubr.f32.vlgmr.msra.gmra.mrb[0].mxu1 %v293_v35 }
  0x53   : > { %596 = vmatprep.mubr.msk.f32.mxu0 %vm775_vm2, %v776_v14  ;;  %608 = vmatprep.mubr.msk.f32.mxu1 %vm775_vm2, %v776_v14 }
  0x56   : > { %597 = vmatmul.mubr.f32.gmra.mrb[2].mxu0 %v290_v36  ;;  %609 = vmatmul.mubr.f32.gmra.mrb[2].mxu1 %v294_v37 }
  0x57   : > { %599 = vmatprep.mubr.msk.f32.mxu0 %vm775_vm2, %v776_v14  ;;  %611 = vmatprep.mubr.msk.f32.mxu1 %vm775_vm2, %v776_v14 }
  0x5a   : > { %600 = vmatmul.mubr.f32.gmra.mrb[4].mxu0 %v291_v38  ;;  %612 = vmatmul.mubr.f32.gmra.mrb[4].mxu1 %v295_v39 }
  0x5b   : > { %602 = vmatprep.mubr.msk.f32.mxu0 %vm775_vm2, %v776_v14 }
  0x5e   : > { %603 = vmatmul.mubr.f32.gmra.mrb[6].mxu0 %v292_v40 }
 0x125   : > { %v362_v43 = vpop.f32.mrb[0].mxu0  ;;  %v382_v44 = vpop.f32.mrb[0].mxu1 }
 0x126   : > { %v396_v45 = vadd.f32 %v362_v43, %v282_v41  ;;  %v595_v46 = vpop.f32.mrb[1].mxu0  ;;  %v400_v47 = vadd.f32 %v382_v44, %v286_v42  ;;  %v607_v48 = vpop.f32.mrb[1].mxu1 }
 0x128   : > { %404 = vst.msk [vmem:[#allocation2] sm:$0xff] %vm403_vm3, %v396_v45  ;;  %408 = vst.msk [vmem:[#allocation2 + $0x20] sm:$0xff] %vm403_vm3, %v400_v47 }
 0x129   : > { %v367_v51 = vpop.f32.mrb[2].mxu0  ;;  %v387_v52 = vpop.f32.mrb[2].mxu1 }
 0x12a   : > { %v397_v53 = vadd.f32 %v367_v51, %v283_v49  ;;  %v598_v54 = vpop.f32.mrb[3].mxu0  ;;  %v401_v55 = vadd.f32 %v387_v52, %v287_v50  ;;  %v610_v56 = vpop.f32.mrb[3].mxu1 }
 0x12c   : > { %405 = vst.msk [vmem:[#allocation2 + $0x8] sm:$0xff] %vm403_vm3, %v397_v53  ;;  %409 = vst.msk [vmem:[#allocation2 + $0x28] sm:$0xff] %vm403_vm3, %v401_v55 }
 0x12d   : > { %v372_v59 = vpop.f32.mrb[4].mxu0  ;;  %v392_v60 = vpop.f32.mrb[4].mxu1 }
 0x12e   : > { %v398_v61 = vadd.f32 %v372_v59, %v284_v57  ;;  %v601_v62 = vpop.f32.mrb[5].mxu0  ;;  %v402_v63 = vadd.f32 %v392_v60, %v288_v58  ;;  %v613_v0 = vpop.f32.mrb[5].mxu1  ;;  %415 = sbr.rel (%p535_p13) target bundleno = 317 (0x13d), region = 74 }
 0x12f   : > { %v416_v5 = vld [vmem:[#allocation2] sm:$0xff] (!%p535_p13) }
 0x130   : > { %406 = vst.msk [vmem:[#allocation2 + $0x10] sm:$0xff] %vm403_vm3, %v398_v61  ;;  %423 = vst.msk [vmem:[%s858_s18] sm:$0xff] (!%p535_p13), %vm403_vm3, %v416_v5  ;;  %v420_v9 = vld [vmem:[#allocation2 + $0x20] sm:$0xff] (!%p535_p13) }
 0x131   : > { %411 = vst.msk [vmem:[#allocation2 + $0x30] sm:$0x3] %vm410_vm4, %v402_v63  ;;  %v377_v2 = vpop.f32.mrb[6].mxu0 }
 0x132   : > { %v399_v3 = vadd.f32 %v377_v2, %v285_v1  ;;  %v604_v4 = vpop.f32.mrb[7].mxu0  ;;  %427 = vst.msk [vmem:[%s858_s18 + $0x20] sm:$0xff] (!%p535_p13), %vm403_vm3, %v420_v9 }
 0x133   : > { %v417_v6 = vld [vmem:[#allocation2 + $0x8] sm:$0xff] (!%p535_p13) }
 0x134   : > { %407 = vst.msk [vmem:[#allocation2 + $0x18] sm:$0xff] %vm403_vm3, %v399_v3  ;;  %424 = vst.msk [vmem:[%s858_s18 + $0x8] sm:$0xff] (!%p535_p13), %vm403_vm3, %v417_v6  ;;  %v421_v10 = vld [vmem:[#allocation2 + $0x28] sm:$0xff] (!%p535_p13) }
 0x135   : > { %428 = vst.msk [vmem:[%s858_s18 + $0x28] sm:$0xff] %vm403_vm3, %v421_v10 }
 0x137   : > { %v418_v7 = vld [vmem:[#allocation2 + $0x10] sm:$0xff] }
 0x138   : > { %425 = vst.msk [vmem:[%s858_s18 + $0x10] sm:$0xff] %vm403_vm3, %v418_v7  ;;  %v422_v11 = vld [vmem:[#allocation2 + $0x30] sm:$0x3] }
 0x139   : > { %429 = vst.msk [vmem:[%s858_s18 + $0x30] sm:$0x3] %vm410_vm4, %v422_v11 }
 0x13b   : > { %v419_v8 = vld [vmem:[#allocation2 + $0x18] sm:$0xff] }
 0x13c   : > { %426 = vst.msk [vmem:[%s858_s18 + $0x18] sm:$0xff] %vm403_vm3, %v419_v8 }
 0x13d PF: > { %s12_s15 = sadd.s32 1, %s771_s15   ;;  %s951_s9 = smov %s751_s10 }
 0x13e   : > { %p9_p0 = scmp.ge.s32.totalorder %s12_s15, 6   ;;  %s952_s10 = smov %s841_s20 }
 0x13f   : > { %s953_s11 = smov %s763_s13  ;;  %s954_s12 = smov %s767_s14 }
 0x140   : > { %s955_s13 = smov %s958_s16  ;;  %s956_s14 = smov %s962_s17 }
 0x141   :  { %11 = sbr.rel (!%p9_p0) target bundleno = 4 (0x4), region = 112 }

</bundles_post_ra>
